<compile_context>
chip_gen: v7x
topology: tpu7x:2x2x1
jax: 0.10.0
libtpu: 0.0.40
codegen_flags: <defaults>
</compile_context>

<pallas_src>
import functools

import jax
import jax.numpy as jnp
from jax.experimental import pallas as pl
from jax.experimental.pallas import tpu as pltpu

_LANE = 128
_SUB = 8
_SMALL_NC = 64  # below this, put W on lanes instead of N*C


# ---------------------------------------------------------------------------
# small helpers
# ---------------------------------------------------------------------------
def _pair(v):
    return tuple(v) if isinstance(v, (tuple, list)) else (v, v)


def _quadruple(v):
    return tuple(v) if isinstance(v, (tuple, list)) else (v,) * 4


def _round_up(x, m):
    return -(-x // m) * m


def _divisors_desc(n):
    return [d for d in range(n, 0, -1) if n % d == 0]


def _sort2(a, b):
    return jnp.minimum(a, b), jnp.maximum(a, b)


def _sort3(a, b, c):
    a, b = _sort2(a, b)
    b, c = _sort2(b, c)
    a, b = _sort2(a, b)
    return a, b, c  # lo <= mid <= hi


def _med3(a, b, c):
    # median of 3 in 4 min/max ops
    mn = jnp.minimum(a, b)
    mx = jnp.maximum(a, b)
    return jnp.maximum(mn, jnp.minimum(mx, c))


def _median9_rowsort(v):
    """Median of a 3x3 window given vals ordered row-major (shared-sort form)."""
    l0, m0, h0 = _sort3(v[0], v[1], v[2])
    l1, m1, h1 = _sort3(v[3], v[4], v[5])
    l2, m2, h2 = _sort3(v[6], v[7], v[8])
    return _med3(
        jnp.maximum(jnp.maximum(l0, l1), l2),
        _med3(m0, m1, m2),
        jnp.minimum(jnp.minimum(h0, h1), h2),
    )


def _lower_median_generic(vals):
    """Full compare-exchange sort network; pick index (n-1)//2 (torch lower median)."""
    p = list(vals)
    n = len(p)
    for i in range(n):
        for j in range(n - 1 - i):
            p[j], p[j + 1] = _sort2(p[j], p[j + 1])
    return p[(n - 1) // 2]


# ---------------------------------------------------------------------------
# tiling heuristics (trace-time, static)
# ---------------------------------------------------------------------------
def _vmem_budget():
    vmem = 64 * 1024 * 1024  # conservative (v7x) fallback
    try:
        info = pltpu.get_tpu_info()
        vmem = int(getattr(info, "vmem_capacity_bytes", vmem))
    except Exception:
        pass
    budget = max(8 << 20, int(vmem * 0.30))          # per-step working set target
    limit = max(32 << 20, int(min(vmem * 0.75, 112 * 1024 * 1024)))
    return budget, limit


def _pick_bh(ho, fits):
    """Largest output-row tile: whole plane if it fits, else a multiple of 8."""
    if fits(ho):
        return ho, 1
    bh = _round_up(ho, _SUB)
    while bh > _SUB and not fits(bh):
        bh = _round_up(max(bh // 2, _SUB), _SUB)
    return bh, -(-ho // bh)


def _select(units_desc, ho, est, budget):
    """Pick (unit, bh, num_strips): biggest unit whose best H-tile fits budget."""
    u, bh, ns = units_desc[-1], ho, 1
    for cand in units_desc:
        bh_c, ns_c = _pick_bh(ho, lambda b, c=cand: est(b, c) <= budget)
        if est(bh_c, cand) <= budget:
            return cand, bh_c, ns_c
        u, bh, ns = cand, bh_c, ns_c
    return u, bh, ns  # nothing fits: smallest unit's pick (vmem_limit is the real guard)


# ---------------------------------------------------------------------------
# kernels
# ---------------------------------------------------------------------------
def _median3x3_s1_kernel(x_ref, halo_ref, o_ref, buf_ref, *, bh, wo, h_axis, w_axis):
    """3x3 / stride-1 median via shared horizontal sort3 + vertical med3 combine.

    x_ref:    main block, `bh` rows along h_axis, full W along w_axis.
    halo_ref: (1, ...) block carrying the 2 extra rows below the main block.
    buf_ref:  VMEM scratch with bh + 2 rows along h_axis.
    """
    def sl(axis, start, size):
        s = [slice(None)] * 3
        s[axis] = slice(start, start + size)
        return tuple(s)

    # Assemble the bh + 2 input rows (main block + 2 halo rows) once in VMEM.
    buf_ref[sl(h_axis, 0, bh)] = x_ref[...]
    buf_ref[sl(h_axis, bh, 2)] = halo_ref[0]

    # Horizontal sort3 along W, computed once per *input* row and shared by the
    # 3 vertically adjacent outputs.  Only 2 misaligned slab reads (offsets 1,2).
    a = buf_ref[sl(w_axis, 0, wo)]
    b = buf_ref[sl(w_axis, 1, wo)]
    c = buf_ref[sl(w_axis, 2, wo)]
    lo, mid, hi = _sort3(a, b, c)

    # Vertical combine: median9 = med3( max3(lo), med3(mid), min3(hi) ).
    lo0, lo1, lo2 = [lo[sl(h_axis, d, bh)] for d in range(3)]
    mi0, mi1, mi2 = [mid[sl(h_axis, d, bh)] for d in range(3)]
    hi0, hi1, hi2 = [hi[sl(h_axis, d, bh)] for d in range(3)]
    mx = jnp.maximum(jnp.maximum(lo0, lo1), lo2)
    mn = jnp.minimum(jnp.minimum(hi0, hi1), hi2)
    md = _med3(mi0, mi1, mi2)
    o_ref[...] = _med3(mx, md, mn)


def _median_generic_kernel(x_ref, halo_ref, o_ref, buf_ref, *, kh, kw, sh, sw, bh, wo, hr):
    """Generic kernel-size / stride path (channels-last layout, lanes = N*C)."""
    rows_in = (bh - 1) * sh + kh
    main_rows = min(bh * sh, rows_in)
    buf_ref[0:main_rows] = x_ref[0:main_rows]
    if hr > 0:
        buf_ref[main_rows:main_rows + hr] = halo_ref[0, 0:hr]
    rows = buf_ref[...]
    lb = rows.shape[-1]
    vals = []
    for di in range(kh):
        for dj in range(kw):
            # TODO(synk): strided extraction for stride > 1 is functional but
            # untuned; the default module config is stride=1 (fast path).
            vals.append(
                jax.lax.slice(
                    rows,
                    (di, dj, 0),
                    (di + sh * (bh - 1) + 1, dj + sw * (wo - 1) + 1, lb),
                    (sh, sw, 1),
                )
            )
    if kh == 3 and kw == 3:
        med = _median9_rowsort(vals)
    else:
        med = _lower_median_generic(vals)
    o_ref[...] = med


# ---------------------------------------------------------------------------
# pallas_call drivers
# ---------------------------------------------------------------------------
def _run_fast_small_nc(xp, N, C, Ho, Wo, itemsize, budget, vmem_limit):
    """3x3, stride-1, N*C small: lanes = W, leading axis = (N*C), sublanes = H."""
    NC = N * C
    Hp, Wp = xp.shape[2], xp.shape[3]
    xb = xp.reshape(NC, Hp, Wp)  # no transpose needed for this layout

    def est(bh, g):
        hin = bh + 2
        per = (2 * (bh * Wp + 2 * Wp + bh * Wo)
               + hin * Wp + 3 * hin * Wo + 4 * bh * Wo)
        return per * g * itemsize

    units = _divisors_desc(NC)
    g, bh, ns = _select(units, Ho, est, budget)
    # Megacore / pipelining: guarantee >= 2 grid steps when possible.
    if (NC // g) * ns == 1:
        if NC >= 2:
            g = max(d for d in units if d <= max(NC // 2, 1))
        elif Ho > _SUB:
            bh = _round_up(-(-Ho // 2), _SUB)
            ns = -(-Ho // bh)

    ho_pad = ns * bh
    h_src = ho_pad + 2
    if h_src > Hp:
        xb = jnp.pad(xb, ((0, 0), (0, h_src - Hp), (0, 0)))
    main = xb[:, :ho_pad, :]
    # Tiny halo side-input (kh-1 rows per strip) instead of duplicating the input.
    halo = jnp.stack(
        [xb[:, st * bh + bh: st * bh + bh + 2, :] for st in range(ns)], axis=0
    )

    kernel = functools.partial(_median3x3_s1_kernel, bh=bh, wo=Wo, h_axis=1, w_axis=2)
    out = pl.pallas_call(
        kernel,
        out_shape=jax.ShapeDtypeStruct((NC, ho_pad, Wo), xp.dtype),
        grid=(NC // g, ns),
        in_specs=[
            pl.BlockSpec((g, bh, Wp), lambda gi, st: (gi, st, 0)),
            pl.BlockSpec((1, g, 2, Wp), lambda gi, st: (st, gi, 0, 0)),
        ],
        out_specs=pl.BlockSpec((g, bh, Wo), lambda gi, st: (gi, st, 0)),
        scratch_shapes=[pltpu.VMEM((g, bh + 2, Wp), xp.dtype)],
        compiler_params=pltpu.CompilerParams(
            dimension_semantics=("parallel", "parallel"),
            vmem_limit_bytes=vmem_limit,
        ),
    )(main, halo)
    return out[:, :Ho, :].reshape(N, C, Ho, Wo)


def _run_fast_big_nc(xp, N, C, Ho, Wo, itemsize, budget, vmem_limit):
    """3x3, stride-1, N*C large: lane-dense channels-last (lanes = N*C)."""
    NC = N * C
    Hp, Wp = xp.shape[2], xp.shape[3]
    L = _round_up(NC, _LANE)
    # TODO(synk): this transpose (and the one on the way out) is a full HBM
    # pass; a channels-last module interface would remove it.
    xl = jnp.transpose(xp, (2, 3, 0, 1)).reshape(Hp, Wp, NC)
    if L != NC:
        xl = jnp.pad(xl, ((0, 0), (0, 0), (0, L - NC)))
    lg_total = L // _LANE

    def est(bh, g):
        hin = bh + 2
        per = (2 * (bh * Wp + 2 * Wp + bh * Wo)
               + hin * Wp + 3 * hin * Wo + 4 * bh * Wo)
        return per * g * _LANE * itemsize

    units = _divisors_desc(lg_total)
    g, bh, ns = _select(units, Ho, est, budget)
    if (lg_total // g) * ns == 1:
        if lg_total >= 2:
            g = max(d for d in units if d <= max(lg_total // 2, 1))
        elif Ho > _SUB:
            bh = _round_up(-(-Ho // 2), _SUB)
            ns = -(-Ho // bh)
    LB = g * _LANE

    ho_pad = ns * bh
    h_src = ho_pad + 2
    if h_src > Hp:
        xl = jnp.pad(xl, ((0, h_src - Hp), (0, 0), (0, 0)))
    main = xl[:ho_pad]
    halo = jnp.stack(
        [xl[st * bh + bh: st * bh + bh + 2] for st in range(ns)], axis=0
    )

    kernel = functools.partial(_median3x3_s1_kernel, bh=bh, wo=Wo, h_axis=0, w_axis=1)
    out = pl.pallas_call(
        kernel,
        out_shape=jax.ShapeDtypeStruct((ho_pad, Wo, L), xp.dtype),
        grid=(L // LB, ns),
        in_specs=[
            pl.BlockSpec((bh, Wp, LB), lambda lb, st: (st, 0, lb)),
            pl.BlockSpec((1, 2, Wp, LB), lambda lb, st: (st, 0, 0, lb)),
        ],
        out_specs=pl.BlockSpec((bh, Wo, LB), lambda lb, st: (st, 0, lb)),
        scratch_shapes=[pltpu.VMEM((bh + 2, Wp, LB), xp.dtype)],
        compiler_params=pltpu.CompilerParams(
            dimension_semantics=("parallel", "parallel"),
            vmem_limit_bytes=vmem_limit,
        ),
    )(main, halo)
    out = out[:Ho, :, :NC].reshape(Ho, Wo, N, C)
    return jnp.transpose(out, (2, 3, 0, 1))


def _run_generic(xp, N, C, Ho, Wo, kh, kw, sh, sw, itemsize, budget, vmem_limit):
    """Any kernel size / stride (channels-last layout, lanes = N*C)."""
    NC = N * C
    Hp, Wp = xp.shape[2], xp.shape[3]
    L = _round_up(NC, _LANE)
    xl = jnp.transpose(xp, (2, 3, 0, 1)).reshape(Hp, Wp, NC)
    if L != NC:
        xl = jnp.pad(xl, ((0, 0), (0, 0), (0, L - NC)))
    lg_total = L // _LANE
    hr = max(kh - sh, 0)
    hr_alloc = max(hr, 1)

    def est(bh, g):
        rows_in = (bh - 1) * sh + kh
        per = (2 * (bh * sh * Wp + hr_alloc * Wp + bh * Wo)
               + rows_in * Wp + (kh * kw + 2) * bh * Wo)
        return per * g * _LANE * itemsize

    units = _divisors_desc(lg_total)
    g, bh, ns = _select(units, Ho, est, budget)
    if (lg_total // g) * ns == 1:
        if lg_total >= 2:
            g = max(d for d in units if d <= max(lg_total // 2, 1))
        elif Ho > _SUB:
            bh = _round_up(-(-Ho // 2), _SUB)
            ns = -(-Ho // bh)
    LB = g * _LANE

    ho_pad = ns * bh
    h_main = ho_pad * sh
    h_src = h_main + hr_alloc
    if h_src > Hp:
        xl = jnp.pad(xl, ((0, h_src - Hp), (0, 0), (0, 0)))
    main = xl[:h_main]
    halo = jnp.stack(
        [xl[st * bh * sh + bh * sh: st * bh * sh + bh * sh + hr_alloc]
         for st in range(ns)],
        axis=0,
    )
    rows_in = (bh - 1) * sh + kh

    kernel = functools.partial(
        _median_generic_kernel, kh=kh, kw=kw, sh=sh, sw=sw, bh=bh, wo=Wo, hr=hr
    )
    out = pl.pallas_call(
        kernel,
        out_shape=jax.ShapeDtypeStruct((ho_pad, Wo, L), xp.dtype),
        grid=(L // LB, ns),
        in_specs=[
            pl.BlockSpec((bh * sh, Wp, LB), lambda lb, st: (st, 0, lb)),
            pl.BlockSpec((1, hr_alloc, Wp, LB), lambda lb, st: (st, 0, 0, lb)),
        ],
        out_specs=pl.BlockSpec((bh, Wo, LB), lambda lb, st: (st, 0, lb)),
        scratch_shapes=[pltpu.VMEM((rows_in, Wp, LB), xp.dtype)],
        compiler_params=pltpu.CompilerParams(
            dimension_semantics=("parallel", "parallel"),
            vmem_limit_bytes=vmem_limit,
        ),
    )(main, halo)
    out = out[:Ho, :, :NC].reshape(Ho, Wo, N, C)
    return jnp.transpose(out, (2, 3, 0, 1))


# ---------------------------------------------------------------------------
# public entry point (mirrors MedianPool2d.forward)
# ---------------------------------------------------------------------------
@functools.partial(
    jax.jit, static_argnames=("kernel_size", "stride", "padding", "same")
)
def median_pool2d(x, kernel_size=3, stride=1, padding=0, same=False):
    """JAX/Pallas equivalent of MedianPool2d.forward. x: (N, C, H, W)."""
    kh, kw = _pair(kernel_size)
    sh, sw = _pair(stride)
    N, C, H, W = x.shape

    # Replicate MedianPool2d._padding
    if same:
        ph = max(kh - sh, 0) if H % sh == 0 else max(kh - H % sh, 0)
        pw = max(kw - sw, 0) if W % sw == 0 else max(kw - W % sw, 0)
        p_l = pw // 2
        p_r = pw - p_l
        p_t = ph // 2
        p_b = ph - p_t
    else:
        p_l, p_r, p_t, p_b = _quadruple(padding)

    xp = x
    if p_l or p_r or p_t or p_b:
        # TODO(synk): reflect padding stays a wrapper-side XLA op; folding the
        # halo reads into the kernel would save one extra HBM round trip.
        xp = jnp.pad(x, ((0, 0), (0, 0), (p_t, p_b), (p_l, p_r)), mode="reflect")

    Hp, Wp = xp.shape[2], xp.shape[3]
    Ho = (Hp - kh) // sh + 1
    Wo = (Wp - kw) // sw + 1
    itemsize = jnp.dtype(x.dtype).itemsize
    budget, vmem_limit = _vmem_budget()
    NC = N * C

    if kh == 3 and kw == 3 and sh == 1 and sw == 1:
        if NC < _SMALL_NC:
            # TODO(synk): very wide W with tiny N*C is not tiled along W yet.
            return _run_fast_small_nc(xp, N, C, Ho, Wo, itemsize, budget, vmem_limit)
        return _run_fast_big_nc(xp, N, C, Ho, Wo, itemsize, budget, vmem_limit)

    # TODO(synk): generic (kernel != 3x3 or stride > 1) path uses the unshared
    # sort network and lanes = N*C even when N*C is small.
    return _run_generic(xp, N, C, Ho, Wo, kh, kw, sh, sw, itemsize, budget, vmem_limit)


# ---------------------------------------------------------------------------
# pure-JAX reference (unfold + sort + lower median), mirrors the torch code
# ---------------------------------------------------------------------------
def _reference_median_pool2d(x, kernel_size=3, stride=1, padding=0, same=False):
    k = _pair(kernel_size)
    s = _pair(stride)
    N, C, H, W = x.shape
    if same:
        ph = max(k[0] - s[0], 0) if H % s[0] == 0 else max(k[0] - H % s[0], 0)
        pw = max(k[1] - s[1], 0) if W % s[1] == 0 else max(k[1] - W % s[1], 0)
        p_l, p_t = pw // 2, ph // 2
        p_r, p_b = pw - p_l, ph - p_t
    else:
        p_l, p_r, p_t, p_b = _quadruple(padding)
    xp = x
    if p_l or p_r or p_t or p_b:
        xp = jnp.pad(x, ((0, 0), (0, 0), (p_t, p_b), (p_l, p_r)), mode="reflect")
    Hp, Wp = xp.shape[2], xp.shape[3]
    Ho = (Hp - k[0]) // s[0] + 1
    Wo = (Wp - k[1]) // s[1] + 1
    windows = []
    for di in range(k[0]):
        for dj in range(k[1]):
            windows.append(
                xp[:, :, di: di + s[0] * (Ho - 1) + 1: s[0],
                          dj: dj + s[1] * (Wo - 1) + 1: s[1]]
            )
    stacked = jnp.stack(windows, axis=-1)  # (N, C, Ho, Wo, k0*k1)
    srt = jnp.sort(stacked, axis=-1)
    return srt[..., (k[0] * k[1] - 1) // 2]  # lower median (torch semantics)


if __name__ == "__main__":
    key = jax.random.PRNGKey(0)
    x = jax.random.normal(key, (2, 4, 16, 16), dtype=jnp.float32)

    # Default module config: kernel_size=3, stride=1, padding=0, same=False
    # (small N*C -> W-on-lanes layout).
    out = jax.block_until_ready(median_pool2d(x))
    ref = _reference_median_pool2d(x)
    assert out.shape == (2, 4, 14, 14), out.shape
    assert jnp.array_equal(out, ref), "mismatch vs reference (default config)"

    # same=True path (reflect padding, 'same' output size).
    out_same = jax.block_until_ready(median_pool2d(x, same=True))
    ref_same = _reference_median_pool2d(x, same=True)
    assert out_same.shape == (2, 4, 16, 16), out_same.shape
    assert jnp.array_equal(out_same, ref_same), "mismatch vs reference (same=True)"

    # Exercise the large-N*C channels-on-lanes layout (and multi-strip halo).
    x2 = jax.random.normal(jax.random.PRNGKey(1), (1, 96, 16, 16), dtype=jnp.float32)
    out2 = jax.block_until_ready(median_pool2d(x2))
    ref2 = _reference_median_pool2d(x2)
    assert out2.shape == (1, 96, 14, 14), out2.shape
    assert jnp.array_equal(out2, ref2), "mismatch vs reference (large N*C)"

    print("KERNEL_OK")
</pallas_src>

<mosaic_0001>
module attributes {stable_mosaic.version = 11 : i64} {
  func.func @_median3x3_s1_kernel(%arg0: i32, %arg1: i32, %arg2: memref<4x14x16xf32, #tpu.memory_space<vmem>>, %arg3: memref<1x4x2x16xf32, #tpu.memory_space<vmem>>, %arg4: memref<4x14x14xf32, #tpu.memory_space<vmem>>, %arg5: memref<4x16x16xf32, #tpu.memory_space<vmem>>) attributes {dimension_semantics = [#tpu.dimension_semantics<parallel>, #tpu.dimension_semantics<parallel>], iteration_bounds = array<i64: 2, 1>, scalar_prefetch = 0 : i64, scratch_operands = 1 : i64, tpu.core_type = #tpu.core_type<tc>, window_params = [{transform_indices = @transform_0, window_bounds = array<i64: 4, 14, 16>}, {transform_indices = @transform_1, window_bounds = array<i64: 1, 4, 2, 16>}, {transform_indices = @transform_2, window_bounds = array<i64: 4, 14, 14>}]} {
    %c0 = arith.constant 0 : index
    %c0_0 = arith.constant 0 : index
    %c0_1 = arith.constant 0 : index
    %0 = vector.load %arg2[%c0, %c0_0, %c0_1] : memref<4x14x16xf32, #tpu.memory_space<vmem>>, vector<4x14x16xf32>
    %c0_2 = arith.constant 0 : index
    %c0_3 = arith.constant 0 : index
    %c0_4 = arith.constant 0 : index
    %1 = vector.load %arg5[%c0_2, %c0_3, %c0_4] : memref<4x16x16xf32, #tpu.memory_space<vmem>>, vector<4x14x16xf32>
    tpu.vector_store %arg5[%c0_2, %c0_3, %c0_4], %0 {strides = array<i32>} : memref<4x16x16xf32, #tpu.memory_space<vmem>>, vector<4x14x16xf32>,
    %c0_5 = arith.constant 0 : index
    %c0_6 = arith.constant 0 : index
    %c0_7 = arith.constant 0 : index
    %c0_8 = arith.constant 0 : index
    %2 = vector.load %arg3[%c0_5, %c0_6, %c0_7, %c0_8] : memref<1x4x2x16xf32, #tpu.memory_space<vmem>>, vector<1x4x2x16xf32>
    %3 = vector.shape_cast %2 : vector<1x4x2x16xf32> to vector<4x2x16xf32>
    %c0_9 = arith.constant 0 : index
    %c14 = arith.constant 14 : index
    %c0_10 = arith.constant 0 : index
    %4 = vector.load %arg5[%c0_9, %c14, %c0_10] : memref<4x16x16xf32, #tpu.memory_space<vmem>>, vector<4x2x16xf32>
    tpu.vector_store %arg5[%c0_9, %c14, %c0_10], %3 {strides = array<i32>} : memref<4x16x16xf32, #tpu.memory_space<vmem>>, vector<4x2x16xf32>,
    %c0_11 = arith.constant 0 : index
    %c0_12 = arith.constant 0 : index
    %c0_13 = arith.constant 0 : index
    %5 = vector.load %arg5[%c0_11, %c0_12, %c0_13] : memref<4x16x16xf32, #tpu.memory_space<vmem>>, vector<4x16x14xf32>
    %c0_14 = arith.constant 0 : index
    %c0_15 = arith.constant 0 : index
    %c1 = arith.constant 1 : index
    %6 = vector.load %arg5[%c0_14, %c0_15, %c1] : memref<4x16x16xf32, #tpu.memory_space<vmem>>, vector<4x16x14xf32>
    %c0_16 = arith.constant 0 : index
    %c0_17 = arith.constant 0 : index
    %c2 = arith.constant 2 : index
    %7 = vector.load %arg5[%c0_16, %c0_17, %c2] : memref<4x16x16xf32, #tpu.memory_space<vmem>>, vector<4x16x14xf32>
    %8 = arith.minimumf %5, %6 : vector<4x16x14xf32>
    %9 = arith.maximumf %5, %6 : vector<4x16x14xf32>
    %10 = arith.minimumf %9, %7 : vector<4x16x14xf32>
    %11 = arith.maximumf %9, %7 : vector<4x16x14xf32>
    %12 = arith.minimumf %8, %10 : vector<4x16x14xf32>
    %13 = arith.maximumf %8, %10 : vector<4x16x14xf32>
    %14 = vector.extract_strided_slice %12 {offsets = [0, 0, 0], sizes = [4, 14, 14], strides = [1, 1, 1]} : vector<4x16x14xf32> to vector<4x14x14xf32>
    %15 = vector.extract_strided_slice %12 {offsets = [0, 1, 0], sizes = [4, 14, 14], strides = [1, 1, 1]} : vector<4x16x14xf32> to vector<4x14x14xf32>
    %16 = vector.extract_strided_slice %12 {offsets = [0, 2, 0], sizes = [4, 14, 14], strides = [1, 1, 1]} : vector<4x16x14xf32> to vector<4x14x14xf32>
    %17 = vector.extract_strided_slice %13 {offsets = [0, 0, 0], sizes = [4, 14, 14], strides = [1, 1, 1]} : vector<4x16x14xf32> to vector<4x14x14xf32>
    %18 = vector.extract_strided_slice %13 {offsets = [0, 1, 0], sizes = [4, 14, 14], strides = [1, 1, 1]} : vector<4x16x14xf32> to vector<4x14x14xf32>
    %19 = vector.extract_strided_slice %13 {offsets = [0, 2, 0], sizes = [4, 14, 14], strides = [1, 1, 1]} : vector<4x16x14xf32> to vector<4x14x14xf32>
    %20 = vector.extract_strided_slice %11 {offsets = [0, 0, 0], sizes = [4, 14, 14], strides = [1, 1, 1]} : vector<4x16x14xf32> to vector<4x14x14xf32>
    %21 = vector.extract_strided_slice %11 {offsets = [0, 1, 0], sizes = [4, 14, 14], strides = [1, 1, 1]} : vector<4x16x14xf32> to vector<4x14x14xf32>
    %22 = vector.extract_strided_slice %11 {offsets = [0, 2, 0], sizes = [4, 14, 14], strides = [1, 1, 1]} : vector<4x16x14xf32> to vector<4x14x14xf32>
    %23 = arith.maximumf %14, %15 : vector<4x14x14xf32>
    %24 = arith.maximumf %23, %16 : vector<4x14x14xf32>
    %25 = arith.minimumf %20, %21 : vector<4x14x14xf32>
    %26 = arith.minimumf %25, %22 : vector<4x14x14xf32>
    %27 = arith.minimumf %17, %18 : vector<4x14x14xf32>
    %28 = arith.maximumf %17, %18 : vector<4x14x14xf32>
    %29 = arith.minimumf %28, %19 : vector<4x14x14xf32>
    %30 = arith.maximumf %27, %29 : vector<4x14x14xf32>
    %31 = arith.minimumf %24, %30 : vector<4x14x14xf32>
    %32 = arith.maximumf %24, %30 : vector<4x14x14xf32>
    %33 = arith.minimumf %32, %26 : vector<4x14x14xf32>
    %34 = arith.maximumf %31, %33 : vector<4x14x14xf32>
    %c0_18 = arith.constant 0 : index
    %c0_19 = arith.constant 0 : index
    %c0_20 = arith.constant 0 : index
    %35 = vector.load %arg4[%c0_18, %c0_19, %c0_20] : memref<4x14x14xf32, #tpu.memory_space<vmem>>, vector<4x14x14xf32>
    tpu.vector_store %arg4[%c0_18, %c0_19, %c0_20], %34 {strides = array<i32>} : memref<4x14x14xf32, #tpu.memory_space<vmem>>, vector<4x14x14xf32>,
    return
  }
  func.func @transform_0(%arg0: i32, %arg1: i32) -> (i32, i32, i32) {
    %c0_i32 = arith.constant 0 : i32
    %c0_i32_0 = arith.constant 0 : i32
    return %arg0, %arg1, %c0_i32 : i32, i32, i32
  }
  func.func @transform_1(%arg0: i32, %arg1: i32) -> (i32, i32, i32, i32) {
    %c0_i32 = arith.constant 0 : i32
    %c0_i32_0 = arith.constant 0 : i32
    %c0_i32_1 = arith.constant 0 : i32
    return %arg1, %arg0, %c0_i32, %c0_i32_0 : i32, i32, i32, i32
  }
  func.func @transform_2(%arg0: i32, %arg1: i32) -> (i32, i32, i32) {
    %c0_i32 = arith.constant 0 : i32
    %c0_i32_0 = arith.constant 0 : i32
    return %arg0, %arg1, %c0_i32 : i32, i32, i32
  }
}

</mosaic_0001>

<bundles_post_ra>
// kernel: median_pool2d.1
= control target key start
LH: loop header
LB: loop body
LE: loop exit
PB: predicated region body
PF: predicated region fallthrough
CT: control target
= control target key end

     0   :  { %7 = vsyncpa [#allocation4], 0  ;;  %s1179_s0 = inlined_call_operand.hbm [shape: f32[8,14,16], index: 0, kind: input, shape index: {}]   ;;  %s1180_s1 = inlined_call_operand.vmem [shape: f32[1,8,2,16], index: 1, kind: input, shape index: {}]   ;;  %s1181_s2 = inlined_call_operand.vmem [shape: f32[8,14,14], index: 2, kind: output, shape index: {}]  }
   0x1   :  { %9 = vsyncpa [#allocation4 + $0x1], 0  ;;  %s921_s9 = smov 0   ;;  %s923_s10 = smov 0  }
   0x2   :  { %s925_s11 = smov 0   ;;  %s927_s12 = smov 0  }
   0x3   :  { %s929_s13 = smov 0   ;;  %s931_s14 = smov 0  }
   0x4 LB: > { %s740_s15 = sadd.s32 4294967295, %s899_s14   ;;  %s27_s16 = sadd.s32 1, %s895_s13  ;;  %s899_s14 = sphi %s931_s14, %s15_s14   ;;  %s895_s13 = sphi %s929_s13, %s1189_s13   ;;  %s891_s12 = sphi %s927_s12, %s1188_s12   ;;  %s887_s11 = sphi %s925_s11, %s1187_s11   ;;  %s883_s10 = sphi %s923_s10, %s1186_s10   ;;  %s879_s9 = sphi %s921_s9, %s1185_s9  }
   0x5   : > { %p29_p0 = scmp.ge.s32.totalorder %s27_s16, 2  ;;  %s36_s17 = sadd.s32 1, %s887_s11 }
   0x6   : > { %p43_p1 = scmp.ne.s32.totalorder %s887_s11, %s883_s10  ;;  %p44_p2 = scmp.eq.s32.totalorder %s899_s14, 0 }
   0x7   : > { %s1191_s16 = smov (%p29_p0, %s27_s16), 0  ;;  %p49_p4 = scmp.ne.s32.totalorder %s883_s10, %s879_s9 }
   0x8   : > { %p957_p3 = por %p44_p2, %p43_p1  ;;  %s31_s19 = ssub.s32 %s895_s13, %s1191_s16 }
   0x9   : > { %p50_p5 = scmp.eq.s32.totalorder %s740_s15, 0  ;;  %p34_p6 = scmp.eq.s32.totalorder %s31_s19, 0 }
   0xa   : > { %p766_p8 = scmp.lt.s32.totalorder %s899_s14, 2  ;;  %s129_s22 = sand.u32 1, %s887_s11  }
   0xb   : > { %p964_p7 = por %p50_p5, %p49_p4  ;;  %s758_s23 = sshll.u32 %s895_s13, 10 }
   0xc   : > { %s970_s21 = scalar_select %p34_p6, %s887_s11, %s36_s17  }
   0xd   : > { %s744_s24 = sshll.u32 %s129_s22, 6  ;;  %s977_s27 = scalar_lea.hbm %s1179_s0, %s758_s23 }
   0xe   : > { %s133_s28 = scalar_lea.vmem [#allocation3], %s744_s24  ;;  %p981_p9 = pnand %p766_p8, %p957_p3 }
   0xf   : > { %s143_s29 = sshll.u32 %s133_s28, 4  ;;  %s987_s3 = scalar_lea.sflag [#allocation4], %s129_s22  ;;  %s985_s29 = int_to_ptr.vmem [resolvable:$true] %s143_s29 }
  0x10   : > { %s819_s4 = scalar_lea.hbm %s977_s27, 1024  ;;  %p821_p11 = pneg %p981_p9 }
  0x11   : > { %p820_p10 = scmp.ne.s32.totalorder %s977_s27, %s819_s4  ;;  %s824_s7 = scalar_lea.hbm %s1179_s0, 2048 }
  0x12   : > { %p825_p0 = scmp.lt.u32.totalorder %s977_s27, %s1179_s0  ;;  %p826_p1 = scmp.lt.u32.totalorder %s824_s7, %s819_s4 }
  0x13   : > { %p822_p12 = pnand %p821_p11, %p820_p10  ;;  %p828_p3 = scmp.lt.u32.totalorder %s819_s4, %s977_s27 }
  0x14   : > { %p827_p2 = por %p826_p1, %p825_p0 }
  0x15   : > { %p823_p13 = pneg %p822_p12 }
  0x16   : > { %p829_p4 = por %p828_p3, %p827_p2 }
  0x18   : > { %p830_p5 = pnand %p829_p4, %p823_p13 }
  0x1a   : > { %833 = shalt.err (!%p830_p5)
}
  0x1b   : > { %s834_s15 = scalar_lea.vmem %s985_s29, 1024  ;;  %s901_s17 = smov [#allocation3]  }
  0x1c   : > { %p835_p6 = scmp.ne.s32.totalorder %s985_s29, %s834_s15  ;;  %s839_s18 = sshll.u32 %s901_s17, 4  ;;  %s840_s18 = int_to_ptr.vmem [resolvable:$false] %s839_s18 }
  0x1d   : > { %s841_s19 = scalar_lea.vmem %s840_s18, 2048  ;;  %p842_p12 = scmp.lt.s32.totalorder %s985_s29, %s840_s18 }
  0x1e   : > { %p837_p8 = pnand %p835_p6, %p821_p11  ;;  %p843_p0 = scmp.lt.s32.totalorder %s841_s19, %s834_s15 }
  0x20   : > { %p838_p10 = pneg %p837_p8  ;;  %p844_p1 = por %p843_p0, %p842_p12 }
  0x22   : > { %p845_p2 = pnand %p844_p1, %p838_p10 }
  0x24   : > { %848 = shalt.err (!%p845_p2)
}
  0x25   : > { %s902_s22 = smov 128   ;;  %s903_s23 = smov 8  }
  0x26   : > { %765 = dma.hbm_to_vmem [thread:$0]  (!%p981_p9), %s977_s27, 1024, %s985_s29, %s987_s3, %s902_s22, %s902_s22, %s903_s23  }
  0x27   : > { %p748_p11 = scmp.ge.s32.totalorder %s899_s14, 1  ;;  %p164_p13 = scmp.lt.s32.totalorder %s899_s14, 3 }
  0x29   : > { %p165_p3 = pnand %p748_p11, %p164_p13 }
  0x2a   : > { %s170_s24 = sand.u32 (!%p165_p3), 1, %s883_s10  }
  0x2b   : > { %168 = sbr.rel (%p165_p3) target bundleno = 249 (0xf9), region = 28  ;;  %s749_s25 = sshll.u32 (!%p165_p3), %s170_s24, 6 }
  0x2c   : > { %s171_s26 = scalar_lea.sflag (!%p165_p3), [#allocation4], %s170_s24  ;;  %s1018_s28 = scalar_lea.vmem (!%p165_p3), [#allocation3], %s749_s25 }
  0x32   : > { %874 = dma.done.wait (%p964_p7), %s171_s26, 1024  }
  0x33   : > { %876 = vsyncadd (%p964_p7), %s171_s26, 4294966272  ;;  %s750_s27 = sshll.u32 %s891_s12, 2  ;;  %vm241_vm0 = vcmask 130048   ;;  %vm243_vm1 = vcmask 128000   ;;  %vm255_vm2 = vcmask 123904   ;;  %v235_v0 = vld [vmem:[%s1018_s28 + $0x10] sm:$0xff] }
  0x34   : > { %p214_p9 = scmp.lt.s32.totalorder %s750_s27, 7  ;;  %v233_v1 = vld [vmem:[%s1018_s28] sm:$0xff]  ;;  %v236_v2 = vld [vmem:[%s1018_s28 + $0x18] sm:$0x3f]  ;;  %245 = vst.msk [vmem:[#allocation2 + $0x10] sm:$0xff] %vm241_vm0, %v235_v0  ;;  %v239_v11 = vld [vmem:[%s1018_s28 + $0x30] sm:$0xff] }
  0x35   : > { %242 = vst.msk [vmem:[#allocation2] sm:$0xff] %vm241_vm0, %v233_v1  ;;  %v234_v4 = vld [vmem:[%s1018_s28 + $0x8] sm:$0x3f]  ;;  %v237_v8 = vld [vmem:[%s1018_s28 + $0x20] sm:$0xff]  ;;  %v240_v9 = vld [vmem:[%s1018_s28 + $0x38] sm:$0x3f] }
  0x36   : > { %s1193_s27 = smov (!%p214_p9, %s750_s27), 7  ;;  %246 = vst.msk [vmem:[#allocation2 + $0x18] sm:$0x3f] %vm243_vm1, %v236_v2  ;;  %244 = vst.msk [vmem:[#allocation2 + $0x8] sm:$0x3f] %vm243_vm1, %v234_v4  ;;  %s904_s12 = smov 127  }
  0x37   : > { %s751_s29 = sshll.u32 %s1193_s27, 1  ;;  %v238_v6 = vld [vmem:[%s1018_s28 + $0x28] sm:$0x3f]  ;;  %247 = vst.msk [vmem:[#allocation2 + $0x20] sm:$0xff] %vm241_vm0, %v237_v8  ;;  %249 = vst.msk [vmem:[#allocation2 + $0x30] sm:$0xff] %vm241_vm0, %v239_v11  ;;  %s905_s20 = smov 126  }
  0x38   : > { %s219_s4 = scalar_lea.vmem %s1180_s1, %s751_s29  ;;  %248 = vst.msk [vmem:[#allocation2 + $0x28] sm:$0x3f] %vm243_vm1, %v238_v6  ;;  %250 = vst.msk [vmem:[#allocation2 + $0x38] sm:$0x3f] %vm243_vm1, %v240_v9  ;;  %vm380_vm3 = vcmask 1046528   ;;  %vm409_vm4 = vcmask 1045504  }
  0x39   : > { %v252_v3 = vld [vmem:[%s219_s4 + $0x2] sm:$0x3]  ;;  %v251_v5 = vld [vmem:[%s219_s4] sm:$0x3]  ;;  %v253_v7 = vld [vmem:[%s219_s4 + $0x4] sm:$0x3] }
  0x3a   : > { %257 = vst.msk [vmem:[#allocation2 + $0x1e] sm:$0x3] %vm255_vm2, %v252_v3  ;;  %256 = vst.msk [vmem:[#allocation2 + $0xe] sm:$0x3] %vm255_vm2, %v251_v5  ;;  %v254_v10 = vld [vmem:[%s219_s4 + $0x6] sm:$0x3] }
  0x3b   : > { %258 = vst.msk [vmem:[#allocation2 + $0x2e] sm:$0x3] %vm255_vm2, %v253_v7  ;;  %259 = vst.msk [vmem:[#allocation2 + $0x3e] sm:$0x3] %vm255_vm2, %v254_v10  ;;  %v262_v12 = vld [vmem:[#allocation2 + $0x10] sm:$0xff]  ;;  %vm616_vm5 = vcmask 111616  }
  0x3c   : > { %v260_v13 = vld [vmem:[#allocation2] sm:$0xff]  ;;  %280 = vrot.lane.b32.xlu1 %v262_v12, %s904_s12  ;;  %s759_s5 = sshll.u32 %s1193_s27, 4  ;;  %vm614_vm6 = vcmask 113664  }
  0x3d   : > { %276 = vrot.lane.b32.xlu0 %v260_v13, %s904_s12  ;;  %s1096_s8 = scalar_lea.vmem %s1181_s2, %s759_s5 }
  0x3e   : > { %v1051_v17 = vld [vmem:[#allocation2 + $0x20] sm:$0xff]  ;;  %v1056_v19 = vld [vmem:[#allocation2 + $0x30] sm:$0xff] }
  0x41   : > { %v263_v14 = vld [vmem:[#allocation2 + $0x18] sm:$0xff]  ;;  %v261_v15 = vld [vmem:[#allocation2 + $0x8] sm:$0xff] }
  0x42   : > { %282 = vrot.lane.b32.xlu1 %v263_v14, %s904_s12  ;;  %278 = vrot.lane.b32.xlu0 %v261_v15, %s904_s12  ;;  %v265_v16 = vld [vmem:[#allocation2 + $0x28] sm:$0xff]  ;;  %v1054_v18 = vld [vmem:[#allocation2 + $0x38] sm:$0xff] }
  0x46   : > { %286 = vrot.lane.b32.xlu1 %v265_v16, %s904_s12  ;;  %284 = vrot.lane.b32.xlu0 %v1051_v17, %s904_s12 }
  0x4a   : > { %318 = vrot.lane.b32.xlu1 %v261_v15, %s905_s20  ;;  %316 = vrot.lane.b32.xlu0 %v260_v13, %s905_s20 }
  0x4e   : > { %290 = vrot.lane.b32.xlu1 %v1054_v18, %s904_s12  ;;  %288 = vrot.lane.b32.xlu0 %v1056_v19, %s904_s12 }
  0x52   : > { %322 = vrot.lane.b32.xlu1 %v263_v14, %s905_s20  ;;  %320 = vrot.lane.b32.xlu0 %v262_v12, %s905_s20 }
  0x56   : > { %326 = vrot.lane.b32.xlu1 %v265_v16, %s905_s20  ;;  %324 = vrot.lane.b32.xlu0 %v1051_v17, %s905_s20 }
  0x5a   : > { %330 = vrot.lane.b32.xlu1 %v1054_v18, %s905_s20  ;;  %328 = vrot.lane.b32.xlu0 %v1056_v19, %s905_s20 }
  0xae   : > { %v281_v20 = vpop.permute.xlu1 %280 }
  0xaf   : > { %v277_v21 = vpop.permute.xlu0 %276  ;;  %v1063_v35 = vmin.f32 %v262_v12, %v281_v20  ;;  %v1065_v36 = vmax.f32 %v262_v12, %v281_v20 }
  0xb0   : > { %v308_v26 = vmax.f32 %v260_v13, %v277_v21  ;;  %v300_v37 = vmin.f32 %v260_v13, %v277_v21 }
  0xb4   : > { %v283_v22 = vpop.permute.xlu1 %282  ;;  %v279_v23 = vpop.permute.xlu0 %278 }
  0xb5   : > { %v309_v27 = vmax.f32 %v261_v15, %v279_v23  ;;  %v301_v28 = vmin.f32 %v261_v15, %v279_v23  ;;  %v303_v38 = vmin.f32 %v263_v14, %v283_v22  ;;  %v311_v39 = vmax.f32 %v263_v14, %v283_v22 }
  0xb8   : > { %v287_v24 = vpop.permute.xlu1 %286  ;;  %v285_v25 = vpop.permute.xlu0 %284 }
  0xb9   : > { %v1070_v57 = vmin.f32 %v265_v16, %v287_v24  ;;  %v1072_v61 = vmax.f32 %v265_v16, %v287_v24  ;;  %v1075_v62 = vmin.f32 %v1051_v17, %v285_v25  ;;  %v1079_v2 = vmax.f32 %v1051_v17, %v285_v25 }
  0xbc   : > { %v319_v29 = vpop.permute.xlu1 %318  ;;  %v317_v30 = vpop.permute.xlu0 %316 }
  0xbd   : > { %v341_v31 = vmin.f32 %v309_v27, %v319_v29  ;;  %v349_v32 = vmax.f32 %v309_v27, %v319_v29  ;;  %v340_v33 = vmin.f32 %v308_v26, %v317_v30  ;;  %v348_v34 = vmax.f32 %v308_v26, %v317_v30 }
  0xbf   : > { %v357_v40 = vmin.f32 %v301_v28, %v341_v31  ;;  %v365_v41 = vmax.f32 %v301_v28, %v341_v31  ;;  %v447_v42 = vrot.slane %v349_v32, 1  ;;  %v475_v43 = vrot.slane %v349_v32, 2 }
  0xc0   : > { %v356_v44 = vmin.f32 %v300_v37, %v340_v33  ;;  %v364_v45 = vmax.f32 %v300_v37, %v340_v33  ;;  %v446_v46 = vrot.slane %v348_v34, 1  ;;  %v291_v47 = vpop.permute.xlu1 %290  ;;  %v474_v51 = vrot.slane %v348_v34, 2  ;;  %v1067_v52 = vpop.permute.xlu0 %288 }
  0xc1   : > { %v382_v48 = vrot.slane %v357_v40, 1  ;;  %v411_v49 = vrot.slane %v357_v40, 2  ;;  %v511_v50 = vrot.slane %v365_v41, 1  ;;  %v467_v53 = vmin.f32 %v349_v32, %v447_v42 }
  0xc2   : > { %v381_v54 = vrot.slane %v356_v44, 1  ;;  %v410_v55 = vrot.slane %v356_v44, 2  ;;  %v448_v56 = vsel %vm380_vm3, %v446_v46, %v447_v42  ;;  %v547_v60 = vrot.slane %v365_v41, 2 }
  0xc3   : > { %v402_v58 = vmax.f32 %v357_v40, %v382_v48  ;;  %v539_v59 = vmax.f32 %v365_v41, %v511_v50  ;;  %v466_v0 = vmin.f32 %v348_v34, %v448_v56  ;;  %v531_v3 = vmin.f32 %v365_v41, %v511_v50 }
  0xc4   : > { %v383_v63 = vsel %vm380_vm3, %v381_v54, %v382_v48  ;;  %v323_v1 = vpop.permute.xlu1 %322  ;;  %v510_v5 = vrot.slane %v364_v45, 1  ;;  %v495_v6 = vmin.f32 %v467_v53, %v475_v43  ;;  %v412_v7 = vsel %vm409_vm4, %v410_v55, %v411_v49  ;;  %v321_v14 = vpop.permute.xlu0 %320 }
  0xc5   : > { %v567_v4 = vmin.f32 %v539_v59, %v547_v60  ;;  %v476_v8 = vsel %vm409_vm4, %v474_v51, %v475_v43  ;;  %v546_v9 = vrot.slane %v364_v45, 2  ;;  %v431_v10 = vmax.f32 %v402_v58, %v411_v49 }
  0xc6   : > { %v401_v12 = vmax.f32 %v356_v44, %v383_v63  ;;  %v512_v13 = vsel %vm380_vm3, %v510_v5, %v511_v50  ;;  %v494_v15 = vmin.f32 %v466_v0, %v476_v8  ;;  %v1085_v17 = vmin.f32 %v1054_v18, %v291_v47 }
  0xc7   : > { %v575_v11 = vmax.f32 %v531_v3, %v567_v4  ;;  %v538_v16 = vmax.f32 %v364_v45, %v512_v13  ;;  %v1088_v20 = vmax.f32 %v1054_v18, %v291_v47  ;;  %v548_v22 = vsel %vm409_vm4, %v546_v9, %v547_v60 }
  0xc8   : > { %v343_v23 = vmin.f32 %v311_v39, %v323_v1  ;;  %v351_v24 = vmax.f32 %v311_v39, %v323_v1  ;;  %v530_v26 = vmin.f32 %v364_v45, %v512_v13  ;;  %v342_v28 = vmin.f32 %v1065_v36, %v321_v14  ;;  %v327_v29 = vpop.permute.xlu1 %326 }
  0xc9   : > { %v591_v21 = vmax.f32 %v431_v10, %v575_v11  ;;  %v583_v25 = vmin.f32 %v431_v10, %v575_v11  ;;  %v566_v27 = vmin.f32 %v538_v16, %v548_v22  ;;  %v430_v18 = vmax.f32 %v401_v12, %v412_v7  ;;  %v325_v22 = vpop.permute.xlu0 %324 }
  0xca   : > { %v359_v31 = vmin.f32 %v303_v38, %v343_v23  ;;  %v367_v32 = vmax.f32 %v303_v38, %v343_v23  ;;  %v450_v33 = vrot.slane %v351_v24, 1  ;;  %v350_v37 = vmax.f32 %v1065_v36, %v321_v14 }
  0xcb   : > { %v599_v30 = vmin.f32 %v591_v21, %v495_v6  ;;  %v574_v34 = vmax.f32 %v530_v26, %v566_v27  ;;  %v358_v39 = vmin.f32 %v1063_v35, %v342_v28  ;;  %v478_v42 = vrot.slane %v351_v24, 2 }
  0xcc   : > { %v385_v41 = vrot.slane %v359_v31, 1  ;;  %v345_v43 = vmin.f32 %v1072_v61, %v327_v29  ;;  %v414_v38 = vrot.slane %v359_v31, 2  ;;  %v514_v45 = vrot.slane %v367_v32, 1 }
  0xcd   : > { %v607_v40 = vmax.f32 %v583_v25, %v599_v30  ;;  %v590_v44 = vmax.f32 %v430_v18, %v574_v34  ;;  %v366_v46 = vmax.f32 %v1063_v35, %v342_v28  ;;  %v582_v47 = vmin.f32 %v430_v18, %v574_v34 }
  0xce   : > { %v469_v48 = vmin.f32 %v351_v24, %v450_v33  ;;  %v550_v49 = vrot.slane %v367_v32, 2  ;;  %v384_v50 = vrot.slane %v358_v39, 1  ;;  %v404_v36 = vmax.f32 %v359_v31, %v385_v41 }
  0xcf   : > { %617 = vst.msk [vmem:[%s1096_s8 + $0x8] sm:$0x3f] %vm616_vm5, %v607_v40  ;;  %v598_v51 = vmin.f32 %v590_v44, %v494_v15  ;;  %v541_v53 = vmax.f32 %v367_v32, %v514_v45  ;;  %v449_v54 = vrot.slane %v350_v37, 1  ;;  %v533_v55 = vmin.f32 %v367_v32, %v514_v45 }
  0xd0   : > { %v386_v56 = vsel %vm380_vm3, %v384_v50, %v385_v41  ;;  %v413_v58 = vrot.slane %v358_v39, 2  ;;  %v477_v59 = vrot.slane %v350_v37, 2  ;;  %v497_v1 = vmin.f32 %v469_v48, %v478_v42 }
  0xd1   : > { %v606_v60 = vmax.f32 %v582_v47, %v598_v51  ;;  %v569_v63 = vmin.f32 %v541_v53, %v550_v49  ;;  %v403_v0 = vmax.f32 %v358_v39, %v386_v56  ;;  %v451_v35 = vsel %vm380_vm3, %v449_v54, %v450_v33  ;;  %v331_v53 = vpop.permute.xlu1 %330 }
  0xd2   : > { %v468_v3 = vmin.f32 %v350_v37, %v451_v35  ;;  %v513_v4 = vrot.slane %v366_v46, 1  ;;  %v549_v5 = vrot.slane %v366_v46, 2  ;;  %v433_v6 = vmax.f32 %v404_v36, %v414_v38 }
  0xd3   : > { %615 = vst.msk [vmem:[%s1096_s8] sm:$0xff] %vm614_vm6, %v606_v60  ;;  %v577_v7 = vmax.f32 %v533_v55, %v569_v63  ;;  %v1109_v8 = vmax.f32 %v1072_v61, %v327_v29  ;;  %v1112_v9 = vmin.f32 %v1070_v57, %v345_v43  ;;  %v415_v10 = vsel %vm409_vm4, %v413_v58, %v414_v38 }
  0xd4   : > { %v479_v11 = vsel %vm409_vm4, %v477_v59, %v478_v42  ;;  %v515_v12 = vsel %vm380_vm3, %v513_v4, %v514_v45  ;;  %v369_v13 = vmax.f32 %v1070_v57, %v345_v43  ;;  %v432_v15 = vmax.f32 %v403_v0, %v415_v10  ;;  %v329_v0 = vpop.permute.xlu0 %328 }
  0xd5   : > { %v593_v14 = vmax.f32 %v433_v6, %v577_v7  ;;  %v496_v16 = vmin.f32 %v468_v3, %v479_v11  ;;  %v540_v21 = vmax.f32 %v366_v46, %v515_v12  ;;  %v585_v23 = vmin.f32 %v433_v6, %v577_v7 }
  0xd6   : > { %v551_v61 = vsel %vm409_vm4, %v549_v5, %v550_v49  ;;  %v388_v24 = vrot.slane %v1112_v9, 1  ;;  %v453_v25 = vrot.slane %v1109_v8, 1  ;;  %v532_v27 = vmin.f32 %v366_v46, %v515_v12 }
  0xd7   : > { %v601_v26 = vmin.f32 %v593_v14, %v497_v1  ;;  %v568_v28 = vmin.f32 %v540_v21, %v551_v61  ;;  %v517_v29 = vrot.slane %v369_v13, 1  ;;  %v417_v57 = vrot.slane %v1112_v9, 2 }
  0xd8   : > { %v406_v30 = vmax.f32 %v1112_v9, %v388_v24  ;;  %v344_v31 = vmin.f32 %v1079_v2, %v325_v22  ;;  %v352_v32 = vmax.f32 %v1079_v2, %v325_v22  ;;  %v553_v37 = vrot.slane %v369_v13, 2 }
  0xd9   : > { %v609_v33 = vmax.f32 %v585_v23, %v601_v26  ;;  %v576_v18 = vmax.f32 %v532_v27, %v568_v28  ;;  %v543_v34 = vmax.f32 %v369_v13, %v517_v29  ;;  %v471_v39 = vmin.f32 %v1109_v8, %v453_v25 }
  0xda   : > { %v481_v40 = vrot.slane %v1109_v8, 2  ;;  %v360_v41 = vmin.f32 %v1075_v62, %v344_v31  ;;  %v368_v42 = vmax.f32 %v1075_v62, %v344_v31  ;;  %v535_v44 = vmin.f32 %v369_v13, %v517_v29 }
  0xdb   : > { %619 = vst.msk [vmem:[%s1096_s8 + $0x18] sm:$0x3f] %vm616_vm5, %v609_v33  ;;  %v592_v43 = vmax.f32 %v432_v15, %v576_v18  ;;  %v571_v38 = vmin.f32 %v543_v34, %v553_v37  ;;  %v452_v45 = vrot.slane %v352_v32, 1  ;;  %v584_v46 = vmin.f32 %v432_v15, %v576_v18 }
  0xdc   : > { %v435_v2 = vmax.f32 %v406_v30, %v417_v57  ;;  %v387_v47 = vrot.slane %v360_v41, 1  ;;  %v516_v48 = vrot.slane %v368_v42, 1  ;;  %v552_v36 = vrot.slane %v368_v42, 2 }
  0xdd   : > { %v600_v49 = vmin.f32 %v592_v43, %v496_v16  ;;  %v579_v50 = vmax.f32 %v535_v44, %v571_v38  ;;  %v454_v51 = vsel %vm380_vm3, %v452_v45, %v453_v25  ;;  %v306_v62 = vmin.f32 %v1056_v19, %v1067_v52 }
  0xde   : > { %v314_v54 = vmax.f32 %v1056_v19, %v1067_v52  ;;  %v499_v55 = vmin.f32 %v471_v39, %v481_v40  ;;  %v389_v56 = vsel %vm380_vm3, %v387_v47, %v388_v24  ;;  %v416_v60 = vrot.slane %v360_v41, 2 }
  0xdf   : > { %v608_v58 = vmax.f32 %v584_v46, %v600_v49  ;;  %v595_v59 = vmax.f32 %v435_v2, %v579_v50  ;;  %v480_v63 = vrot.slane %v352_v32, 2  ;;  %v587_v35 = vmin.f32 %v435_v2, %v579_v50 }
  0xe0   : > { %v470_v1 = vmin.f32 %v352_v32, %v454_v51  ;;  %v518_v3 = vsel %vm380_vm3, %v516_v48, %v517_v29  ;;  %v347_v4 = vmin.f32 %v1088_v20, %v331_v53  ;;  %v405_v6 = vmax.f32 %v360_v41, %v389_v56 }
  0xe1   : > { %618 = vst.msk [vmem:[%s1096_s8 + $0x10] sm:$0xff] %vm614_vm6, %v608_v58  ;;  %v603_v5 = vmin.f32 %v595_v59, %v499_v55  ;;  %v542_v19 = vmax.f32 %v368_v42, %v518_v3  ;;  %v554_v52 = vsel %vm409_vm4, %v552_v36, %v553_v37  ;;  %v355_v7 = vmax.f32 %v1088_v20, %v331_v53 }
  0xe2   : > { %v363_v8 = vmin.f32 %v1085_v17, %v347_v4  ;;  %v371_v9 = vmax.f32 %v1085_v17, %v347_v4  ;;  %v346_v10 = vmin.f32 %v314_v54, %v329_v0  ;;  %v418_v12 = vsel %vm409_vm4, %v416_v60, %v417_v57 }
  0xe3   : > { %v611_v11 = vmax.f32 %v587_v35, %v603_v5  ;;  %v534_v13 = vmin.f32 %v368_v42, %v518_v3  ;;  %v570_v14 = vmin.f32 %v542_v19, %v554_v52  ;;  %v482_v15 = vsel %vm409_vm4, %v480_v63, %v481_v40 }
  0xe4   : > { %v391_v16 = vrot.slane %v363_v8, 1  ;;  %v456_v21 = vrot.slane %v355_v7, 1  ;;  %v354_v22 = vmax.f32 %v314_v54, %v329_v0  ;;  %v434_v23 = vmax.f32 %v405_v6, %v418_v12 }
  0xe5   : > { %621 = vst.msk [vmem:[%s1096_s8 + $0x28] sm:$0x3f] %vm616_vm5, %v611_v11  ;;  %v578_v61 = vmax.f32 %v534_v13, %v570_v14  ;;  %v520_v20 = vrot.slane %v371_v9, 1  ;;  %v362_v24 = vmin.f32 %v306_v62, %v346_v10  ;;  %v498_v25 = vmin.f32 %v470_v1, %v482_v15 }
  0xe6   : > { %v370_v26 = vmax.f32 %v306_v62, %v346_v10  ;;  %v408_v27 = vmax.f32 %v363_v8, %v391_v16  ;;  %v556_v29 = vrot.slane %v371_v9, 2  ;;  %v420_v30 = vrot.slane %v363_v8, 2 }
  0xe7   : > { %v594_v17 = vmax.f32 %v434_v23, %v578_v61  ;;  %v545_v28 = vmax.f32 %v371_v9, %v520_v20  ;;  %v473_v57 = vmin.f32 %v355_v7, %v456_v21  ;;  %v390_v31 = vrot.slane %v362_v24, 1 }
  0xe8   : > { %v455_v32 = vrot.slane %v354_v22, 1  ;;  %v586_v33 = vmin.f32 %v434_v23, %v578_v61  ;;  %v537_v34 = vmin.f32 %v371_v9, %v520_v20  ;;  %v484_v39 = vrot.slane %v355_v7, 2 }
  0xe9   : > { %v602_v18 = vmin.f32 %v594_v17, %v498_v25  ;;  %v573_v37 = vmin.f32 %v545_v28, %v556_v29  ;;  %v519_v40 = vrot.slane %v370_v26, 1  ;;  %v437_v42 = vmax.f32 %v408_v27, %v420_v30 }
  0xea   : > { %v392_v44 = vsel %vm380_vm3, %v390_v31, %v391_v16  ;;  %v555_v45 = vrot.slane %v370_v26, 2  ;;  %v501_v46 = vmin.f32 %v473_v57, %v484_v39  ;;  %v419_v47 = vrot.slane %v362_v24, 2 }
  0xeb   : > { %v610_v41 = vmax.f32 %v586_v33, %v602_v18  ;;  %v581_v43 = vmax.f32 %v537_v34, %v573_v37  ;;  %v521_v38 = vsel %vm380_vm3, %v519_v40, %v520_v20  ;;  %v457_v48 = vsel %vm380_vm3, %v455_v32, %v456_v21 }
  0xec   : > { %v407_v49 = vmax.f32 %v362_v24, %v392_v44  ;;  %v544_v50 = vmax.f32 %v370_v26, %v521_v38  ;;  %v483_v53 = vrot.slane %v354_v22, 2  ;;  %v557_v62 = vsel %vm409_vm4, %v555_v45, %v556_v29 }
  0xed   : > { %620 = vst.msk [vmem:[%s1096_s8 + $0x20] sm:$0xff] %vm614_vm6, %v610_v41  ;;  %v597_v2 = vmax.f32 %v437_v42, %v581_v43  ;;  %v589_v51 = vmin.f32 %v437_v42, %v581_v43  ;;  %v472_v54 = vmin.f32 %v354_v22, %v457_v48  ;;  %v536_v55 = vmin.f32 %v370_v26, %v521_v38 }
  0xee   : > { %v572_v56 = vmin.f32 %v544_v50, %v557_v62  ;;  %v421_v59 = vsel %vm409_vm4, %v419_v47, %v420_v30  ;;  %v485_v0 = vsel %vm409_vm4, %v483_v53, %v484_v39 }
  0xef   : > { %v605_v36 = vmin.f32 %v597_v2, %v501_v46  ;;  %v436_v60 = vmax.f32 %v407_v49, %v421_v59  ;;  %v500_v35 = vmin.f32 %v472_v54, %v485_v0 }
  0xf0   : > { %v580_v63 = vmax.f32 %v536_v55, %v572_v56 }
  0xf1   : > { %v613_v58 = vmax.f32 %v589_v51, %v605_v36 }
  0xf2   : > { %v596_v1 = vmax.f32 %v436_v60, %v580_v63  ;;  %v588_v3 = vmin.f32 %v436_v60, %v580_v63 }
  0xf3   : > { %623 = vst.msk [vmem:[%s1096_s8 + $0x38] sm:$0x3f] %vm616_vm5, %v613_v58 }
  0xf4   : > { %v604_v4 = vmin.f32 %v596_v1, %v500_v35 }
  0xf6   : > { %v612_v5 = vmax.f32 %v588_v3, %v604_v4 }
  0xf8   : > { %622 = vst.msk [vmem:[%s1096_s8 + $0x30] sm:$0xff] %vm614_vm6, %v612_v5 }
  0xf9 PF: > { %s15_s14 = sadd.s32 1, %s899_s14   ;;  %s1185_s9 = smov %s883_s10 }
  0xfa   : > { %p12_p7 = scmp.ge.s32.totalorder %s15_s14, 4   ;;  %s1186_s10 = smov %s887_s11 }
  0xfb   : > { %s1187_s11 = smov %s970_s21  ;;  %s1188_s12 = smov %s895_s13 }
  0xfc   : > { %s1189_s13 = smov %s1191_s16  ;;  %14 = sbr.rel (!%p12_p7) target bundleno = 4 (0x4), region = 71 }
 0x103   :  { %657 = vsyncpa [#allocation4], 1 }
 0x104   :  { %659 = vsyncpa [#allocation4 + $0x1], 1 }

</bundles_post_ra>
